<compile_context>
chip_gen: v6e
topology: v6e:2x2x1
jax: 0.10.0
libtpu: 0.0.40
codegen_flags: <defaults>
</compile_context>

<pallas_src>
import functools

import jax
import jax.numpy as jnp
import numpy as np
from jax.experimental import pallas as pl
from jax.experimental.pallas import tpu as pltpu


def cnn_liu_kernel(wcol_ref, bcol_ref, a_ref, b_ref, o_ref, *, Cin, K, Lp):
    """Fused Conv1d(k=K, stride=1) + MaxPool1d(2,2) + ReLU, VPU-only.

    Sublane row index r = parity*(N*Cout) + n*Cout + co, parity 0 -> conv
    output y[2t], parity 1 -> y[2t+1].

    wcol_ref: (Cin, K, R, 1) f32 VMEM  per-sublane weight columns, R = 2*N*Cout
    bcol_ref: (R, 1)         f32 VMEM  per-sublane bias column
    a_ref:    (Cin, R, Lh)   f32 VMEM  even-tap operand streams
    b_ref:    (Cin, R, Lh)   f32 VMEM  odd-tap operand streams
    o_ref:    (N*Cout, Lp)   f32 VMEM  pooled + relu output (lane-dense)
    """
    R = bcol_ref.shape[0]          # 2 * N * Cout  (= 8: one full f32 vreg)
    half = o_ref.shape[0]          # N * Cout      (= 4)

    # Bias init: one (R,1) -> (R,Lp) lane broadcast, hoisted out of all loops.
    acc = jnp.broadcast_to(bcol_ref[...], (R, Lp))

    for ci in range(Cin):
        # One full-block load per stream per input channel; reused by all taps.
        a_full = a_ref[ci]         # (R, Lh)
        b_full = b_ref[ci]         # (R, Lh)
        for k in range(K):         # fully unrolled static loop (K = 5)
            s = k // 2
            src = a_full if k % 2 == 0 else b_full
            # (R,1) per-sublane weight broadcast along lanes * (R,Lp) slice:
            # one full-vreg multiply-add per tap.
            acc = acc + wcol_ref[ci, k] * src[:, s:s + Lp]

    # MaxPool1d(2,2): parity-0 rows (top half) vs parity-1 rows (bottom half).
    pooled = jnp.maximum(acc[:half, :], acc[half:, :])
    # ReLU + single unmasked lane-dense full-block store.
    o_ref[...] = jnp.maximum(pooled, 0.0).astype(o_ref.dtype)


@jax.jit
def cnn_liu_forward(x, W, b):
    """x: (N, Cin, L) f32, W: (Cout, Cin, K), b: (Cout,) -> (N, Cout, Lp)."""
    N, Cin, L = x.shape
    Cout, _, K = W.shape
    assert L % 2 == 0 and K % 2 == 1
    Lc = L - K + 1                 # conv output length (stride 1, no padding)
    assert Lc % 2 == 0, "choose L so that the conv output length is even"
    Lp = Lc // 2                   # pooled length
    Lh = L // 2                    # even/odd stream length

    x = x.astype(jnp.float32)
    x2 = x.reshape(N * Cin, L)                       # zero-cost reshape

    # Even / odd / shifted-even streams of the length axis.
    #   y[2t]   = sum_k W[k] * (xe[t+k//2] if k even else xo[t+k//2])
    #   y[2t+1] = sum_k W[k] * (xo[t+k//2] if k even else xe1[t+k//2])
    xe = x2[:, 0::2]                                 # (N*Cin, Lh)  x[2m]
    xo = x2[:, 1::2]                                 # (N*Cin, Lh)  x[2m+1]
    xe1 = jnp.pad(x2[:, 2::2], ((0, 0), (0, 1)))     # x[2m+2], padded to Lh

    # Sublane-pack streams: row r = parity*(N*Cout) + n*Cout + co uses the
    # (n, ci) stream, duplicated across co (only the weight differs per co).
    dup = np.asarray([n * Cin for n in range(N) for _ in range(Cout)])
    a_list, b_list = [], []
    for ci in range(Cin):
        rows = dup + ci
        a_list.append(jnp.concatenate([xe[rows], xo[rows]], axis=0))   # even-k
        b_list.append(jnp.concatenate([xo[rows], xe1[rows]], axis=0))  # odd-k
    A = jnp.stack(a_list)    # (Cin, R, Lh)
    B = jnp.stack(b_list)    # (Cin, R, Lh)

    # Per-sublane weight / bias columns (row r -> W[co, ci, k], b[co]).
    # In a real model this is one-time parameter-init work.
    co_idx = np.asarray(
        [co for _parity in range(2) for _n in range(N) for co in range(Cout)])
    wcol = jnp.transpose(W.astype(jnp.float32)[co_idx], (1, 2, 0))[..., None]
    bcol = b.astype(jnp.float32)[co_idx][:, None]                     # (R, 1)

    kernel = functools.partial(cnn_liu_kernel, Cin=Cin, K=K, Lp=Lp)

    out = pl.pallas_call(
        kernel,
        out_shape=jax.ShapeDtypeStruct((N * Cout, Lp), jnp.float32),
        in_specs=[
            pl.BlockSpec(memory_space=pltpu.MemorySpace.VMEM),   # weight cols
            pl.BlockSpec(memory_space=pltpu.MemorySpace.VMEM),   # bias col
            pl.BlockSpec(memory_space=pltpu.MemorySpace.VMEM),   # even-tap A
            pl.BlockSpec(memory_space=pltpu.MemorySpace.VMEM),   # odd-tap  B
        ],
        out_specs=pl.BlockSpec(memory_space=pltpu.MemorySpace.VMEM),
    )(wcol, bcol, A, B)

    # (N*Cout, Lp) -> (N, Cout, Lp): zero-cost reshape
    return out.reshape(N, Cout, Lp)


def ref_forward(x, W, b):
    """Pure-JAX reference mirroring the PyTorch forward."""
    N, Cin, L = x.shape
    Cout, _, K = W.shape
    Lc = L - K + 1
    windows = jnp.stack([x[:, :, k:k + Lc] for k in range(K)], axis=-1)
    conv = jnp.einsum('nclk,ock->nol', windows, W) + b[None, :, None]
    Lp = Lc // 2
    pooled = jnp.max(conv[:, :, :2 * Lp].reshape(N, Cout, Lp, 2), axis=-1)
    return jnp.maximum(pooled, 0.0)


if __name__ == "__main__":
    key = jax.random.PRNGKey(0)
    kx, kw, kb = jax.random.split(key, 3)

    # L = 260 -> conv length 256 -> pooled length 128: the output is exactly
    # one lane-dense (multiple-of-128) slab -> fully unmasked stores.
    N, Cin, Cout, K, L = 2, 2, 2, 5, 260
    x = jax.random.normal(kx, (N, Cin, L), dtype=jnp.float32)

    # Deterministic params (PyTorch Conv1d shapes / fan-in bound)
    bound = 1.0 / np.sqrt(Cin * K)
    W = jax.random.uniform(kw, (Cout, Cin, K), minval=-bound, maxval=bound,
                           dtype=jnp.float32)
    b = jax.random.uniform(kb, (Cout,), minval=-bound, maxval=bound,
                           dtype=jnp.float32)

    out = cnn_liu_forward(x, W, b)
    out = jax.block_until_ready(out)

    ref = ref_forward(x, W, b)
    np.testing.assert_allclose(np.asarray(out), np.asarray(ref),
                               rtol=1e-5, atol=1e-5)
    print("KERNEL_OK")
</pallas_src>

<mosaic_0001>
module attributes {stable_mosaic.version = 11 : i64} {
  func.func @cnn_liu_kernel(%arg0: memref<2x5x8x1xf32, #tpu.memory_space<vmem>>, %arg1: memref<8x1xf32, #tpu.memory_space<vmem>>, %arg2: memref<2x8x130xf32, #tpu.memory_space<vmem>>, %arg3: memref<2x8x130xf32, #tpu.memory_space<vmem>>, %arg4: memref<4x128xf32, #tpu.memory_space<vmem>>) attributes {dimension_semantics = [], scalar_prefetch = 0 : i64, scratch_operands = 0 : i64, tpu.core_type = #tpu.core_type<tc>} {
    %c0 = arith.constant 0 : index
    %c0_0 = arith.constant 0 : index
    %0 = vector.load %arg1[%c0, %c0_0] : memref<8x1xf32, #tpu.memory_space<vmem>>, vector<8x1xf32>
    %1 = vector.shape_cast %0 : vector<8x1xf32> to vector<8x1xf32>
    %2 = vector.broadcast %1 : vector<8x1xf32> to vector<8x128xf32>
    %c0_1 = arith.constant 0 : index
    %c0_2 = arith.constant 0 : index
    %c0_3 = arith.constant 0 : index
    %3 = vector.load %arg2[%c0_1, %c0_2, %c0_3] : memref<2x8x130xf32, #tpu.memory_space<vmem>>, vector<1x8x130xf32>
    %4 = vector.shape_cast %3 : vector<1x8x130xf32> to vector<8x130xf32>
    %c0_4 = arith.constant 0 : index
    %c0_5 = arith.constant 0 : index
    %c0_6 = arith.constant 0 : index
    %5 = vector.load %arg3[%c0_4, %c0_5, %c0_6] : memref<2x8x130xf32, #tpu.memory_space<vmem>>, vector<1x8x130xf32>
    %6 = vector.shape_cast %5 : vector<1x8x130xf32> to vector<8x130xf32>
    %c0_7 = arith.constant 0 : index
    %c0_8 = arith.constant 0 : index
    %c0_9 = arith.constant 0 : index
    %c0_10 = arith.constant 0 : index
    %7 = vector.load %arg0[%c0_7, %c0_8, %c0_9, %c0_10] : memref<2x5x8x1xf32, #tpu.memory_space<vmem>>, vector<1x1x8x1xf32>
    %8 = vector.shape_cast %7 : vector<1x1x8x1xf32> to vector<8x1xf32>
    %9 = vector.extract_strided_slice %4 {offsets = [0, 0], sizes = [8, 128], strides = [1, 1]} : vector<8x130xf32> to vector<8x128xf32>
    %10 = vector.broadcast %8 : vector<8x1xf32> to vector<8x128xf32>
    %11 = arith.mulf %10, %9 : vector<8x128xf32>
    %12 = arith.addf %2, %11 : vector<8x128xf32>
    %c0_11 = arith.constant 0 : index
    %c1 = arith.constant 1 : index
    %c0_12 = arith.constant 0 : index
    %c0_13 = arith.constant 0 : index
    %13 = vector.load %arg0[%c0_11, %c1, %c0_12, %c0_13] : memref<2x5x8x1xf32, #tpu.memory_space<vmem>>, vector<1x1x8x1xf32>
    %14 = vector.shape_cast %13 : vector<1x1x8x1xf32> to vector<8x1xf32>
    %15 = vector.extract_strided_slice %6 {offsets = [0, 0], sizes = [8, 128], strides = [1, 1]} : vector<8x130xf32> to vector<8x128xf32>
    %16 = vector.broadcast %14 : vector<8x1xf32> to vector<8x128xf32>
    %17 = arith.mulf %16, %15 : vector<8x128xf32>
    %18 = arith.addf %12, %17 : vector<8x128xf32>
    %c0_14 = arith.constant 0 : index
    %c2 = arith.constant 2 : index
    %c0_15 = arith.constant 0 : index
    %c0_16 = arith.constant 0 : index
    %19 = vector.load %arg0[%c0_14, %c2, %c0_15, %c0_16] : memref<2x5x8x1xf32, #tpu.memory_space<vmem>>, vector<1x1x8x1xf32>
    %20 = vector.shape_cast %19 : vector<1x1x8x1xf32> to vector<8x1xf32>
    %21 = vector.extract_strided_slice %4 {offsets = [0, 1], sizes = [8, 128], strides = [1, 1]} : vector<8x130xf32> to vector<8x128xf32>
    %22 = vector.broadcast %20 : vector<8x1xf32> to vector<8x128xf32>
    %23 = arith.mulf %22, %21 : vector<8x128xf32>
    %24 = arith.addf %18, %23 : vector<8x128xf32>
    %c0_17 = arith.constant 0 : index
    %c3 = arith.constant 3 : index
    %c0_18 = arith.constant 0 : index
    %c0_19 = arith.constant 0 : index
    %25 = vector.load %arg0[%c0_17, %c3, %c0_18, %c0_19] : memref<2x5x8x1xf32, #tpu.memory_space<vmem>>, vector<1x1x8x1xf32>
    %26 = vector.shape_cast %25 : vector<1x1x8x1xf32> to vector<8x1xf32>
    %27 = vector.extract_strided_slice %6 {offsets = [0, 1], sizes = [8, 128], strides = [1, 1]} : vector<8x130xf32> to vector<8x128xf32>
    %28 = vector.broadcast %26 : vector<8x1xf32> to vector<8x128xf32>
    %29 = arith.mulf %28, %27 : vector<8x128xf32>
    %30 = arith.addf %24, %29 : vector<8x128xf32>
    %c0_20 = arith.constant 0 : index
    %c4 = arith.constant 4 : index
    %c0_21 = arith.constant 0 : index
    %c0_22 = arith.constant 0 : index
    %31 = vector.load %arg0[%c0_20, %c4, %c0_21, %c0_22] : memref<2x5x8x1xf32, #tpu.memory_space<vmem>>, vector<1x1x8x1xf32>
    %32 = vector.shape_cast %31 : vector<1x1x8x1xf32> to vector<8x1xf32>
    %33 = vector.extract_strided_slice %4 {offsets = [0, 2], sizes = [8, 128], strides = [1, 1]} : vector<8x130xf32> to vector<8x128xf32>
    %34 = vector.broadcast %32 : vector<8x1xf32> to vector<8x128xf32>
    %35 = arith.mulf %34, %33 : vector<8x128xf32>
    %36 = arith.addf %30, %35 : vector<8x128xf32>
    %c1_23 = arith.constant 1 : index
    %c0_24 = arith.constant 0 : index
    %c0_25 = arith.constant 0 : index
    %37 = vector.load %arg2[%c1_23, %c0_24, %c0_25] : memref<2x8x130xf32, #tpu.memory_space<vmem>>, vector<1x8x130xf32>
    %38 = vector.shape_cast %37 : vector<1x8x130xf32> to vector<8x130xf32>
    %c1_26 = arith.constant 1 : index
    %c0_27 = arith.constant 0 : index
    %c0_28 = arith.constant 0 : index
    %39 = vector.load %arg3[%c1_26, %c0_27, %c0_28] : memref<2x8x130xf32, #tpu.memory_space<vmem>>, vector<1x8x130xf32>
    %40 = vector.shape_cast %39 : vector<1x8x130xf32> to vector<8x130xf32>
    %c1_29 = arith.constant 1 : index
    %c0_30 = arith.constant 0 : index
    %c0_31 = arith.constant 0 : index
    %c0_32 = arith.constant 0 : index
    %41 = vector.load %arg0[%c1_29, %c0_30, %c0_31, %c0_32] : memref<2x5x8x1xf32, #tpu.memory_space<vmem>>, vector<1x1x8x1xf32>
    %42 = vector.shape_cast %41 : vector<1x1x8x1xf32> to vector<8x1xf32>
    %43 = vector.extract_strided_slice %38 {offsets = [0, 0], sizes = [8, 128], strides = [1, 1]} : vector<8x130xf32> to vector<8x128xf32>
    %44 = vector.broadcast %42 : vector<8x1xf32> to vector<8x128xf32>
    %45 = arith.mulf %44, %43 : vector<8x128xf32>
    %46 = arith.addf %36, %45 : vector<8x128xf32>
    %c1_33 = arith.constant 1 : index
    %c1_34 = arith.constant 1 : index
    %c0_35 = arith.constant 0 : index
    %c0_36 = arith.constant 0 : index
    %47 = vector.load %arg0[%c1_33, %c1_34, %c0_35, %c0_36] : memref<2x5x8x1xf32, #tpu.memory_space<vmem>>, vector<1x1x8x1xf32>
    %48 = vector.shape_cast %47 : vector<1x1x8x1xf32> to vector<8x1xf32>
    %49 = vector.extract_strided_slice %40 {offsets = [0, 0], sizes = [8, 128], strides = [1, 1]} : vector<8x130xf32> to vector<8x128xf32>
    %50 = vector.broadcast %48 : vector<8x1xf32> to vector<8x128xf32>
    %51 = arith.mulf %50, %49 : vector<8x128xf32>
    %52 = arith.addf %46, %51 : vector<8x128xf32>
    %c1_37 = arith.constant 1 : index
    %c2_38 = arith.constant 2 : index
    %c0_39 = arith.constant 0 : index
    %c0_40 = arith.constant 0 : index
    %53 = vector.load %arg0[%c1_37, %c2_38, %c0_39, %c0_40] : memref<2x5x8x1xf32, #tpu.memory_space<vmem>>, vector<1x1x8x1xf32>
    %54 = vector.shape_cast %53 : vector<1x1x8x1xf32> to vector<8x1xf32>
    %55 = vector.extract_strided_slice %38 {offsets = [0, 1], sizes = [8, 128], strides = [1, 1]} : vector<8x130xf32> to vector<8x128xf32>
    %56 = vector.broadcast %54 : vector<8x1xf32> to vector<8x128xf32>
    %57 = arith.mulf %56, %55 : vector<8x128xf32>
    %58 = arith.addf %52, %57 : vector<8x128xf32>
    %c1_41 = arith.constant 1 : index
    %c3_42 = arith.constant 3 : index
    %c0_43 = arith.constant 0 : index
    %c0_44 = arith.constant 0 : index
    %59 = vector.load %arg0[%c1_41, %c3_42, %c0_43, %c0_44] : memref<2x5x8x1xf32, #tpu.memory_space<vmem>>, vector<1x1x8x1xf32>
    %60 = vector.shape_cast %59 : vector<1x1x8x1xf32> to vector<8x1xf32>
    %61 = vector.extract_strided_slice %40 {offsets = [0, 1], sizes = [8, 128], strides = [1, 1]} : vector<8x130xf32> to vector<8x128xf32>
    %62 = vector.broadcast %60 : vector<8x1xf32> to vector<8x128xf32>
    %63 = arith.mulf %62, %61 : vector<8x128xf32>
    %64 = arith.addf %58, %63 : vector<8x128xf32>
    %c1_45 = arith.constant 1 : index
    %c4_46 = arith.constant 4 : index
    %c0_47 = arith.constant 0 : index
    %c0_48 = arith.constant 0 : index
    %65 = vector.load %arg0[%c1_45, %c4_46, %c0_47, %c0_48] : memref<2x5x8x1xf32, #tpu.memory_space<vmem>>, vector<1x1x8x1xf32>
    %66 = vector.shape_cast %65 : vector<1x1x8x1xf32> to vector<8x1xf32>
    %67 = vector.extract_strided_slice %38 {offsets = [0, 2], sizes = [8, 128], strides = [1, 1]} : vector<8x130xf32> to vector<8x128xf32>
    %68 = vector.broadcast %66 : vector<8x1xf32> to vector<8x128xf32>
    %69 = arith.mulf %68, %67 : vector<8x128xf32>
    %70 = arith.addf %64, %69 : vector<8x128xf32>
    %71 = vector.extract_strided_slice %70 {offsets = [0, 0], sizes = [4, 128], strides = [1, 1]} : vector<8x128xf32> to vector<4x128xf32>
    %72 = vector.extract_strided_slice %70 {offsets = [4, 0], sizes = [4, 128], strides = [1, 1]} : vector<8x128xf32> to vector<4x128xf32>
    %73 = arith.maximumf %71, %72 : vector<4x128xf32>
    %cst = arith.constant 0.000000e+00 : f32
    %74 = vector.broadcast %cst : f32 to vector<4x128xf32>
    %75 = arith.maximumf %73, %74 : vector<4x128xf32>
    %c0_49 = arith.constant 0 : index
    %c0_50 = arith.constant 0 : index
    %76 = vector.load %arg4[%c0_49, %c0_50] : memref<4x128xf32, #tpu.memory_space<vmem>>, vector<4x128xf32>
    tpu.vector_store %arg4[%c0_49, %c0_50], %75 {strides = array<i32>} : memref<4x128xf32, #tpu.memory_space<vmem>>, vector<4x128xf32>,
    return
  }
}

</mosaic_0001>

<bundles_post_ra>
// kernel: cnn_liu_forward.1
= control target key start
LH: loop header
LB: loop body
LE: loop exit
PB: predicated region body
PF: predicated region fallthrough
CT: control target
= control target key end

     0   :  { %v240_v2 = vmov 0   ;;  %s343_s0 = inlined_call_operand.vmem [shape: f32[2,5,8,1], index: 0, kind: input, shape index: {}]   ;;  %s344_s1 = inlined_call_operand.vmem [shape: f32[8,1], index: 1, kind: input, shape index: {}]   ;;  %s345_s2 = inlined_call_operand.vmem [shape: f32[2,8,130], index: 2, kind: input, shape index: {}]   ;;  %s346_s3 = inlined_call_operand.vmem [shape: f32[2,8,130], index: 3, kind: input, shape index: {}]   ;;  %s347_s4 = inlined_call_operand.hbm [shape: f32[4,128], index: 4, kind: output, shape index: {}]  }
   0x1   :  { %v202_v0 = vld [vmem:[%s343_s0 + $0x20] sm:$0xff]  ;;  %v200_v1 = vld [vmem:[%s343_s0 + $0x10] sm:$0xff]  ;;  %217 = vset.pattern.permute.xlu1 %v240_v2  ;;  %216 = vset.pattern.permute.xlu0 %v240_v2  ;;  %v209_v3 = vld [vmem:[%s343_s0 + $0x38] sm:$0xff] }
   0x2   :  { %86 = vperm.xlu1 %217, %v202_v0   ;;  %49 = vperm.xlu0 %216, %v200_v1   ;;  %v201_v4 = vld [vmem:[%s343_s0 + $0x18] sm:$0xff] }
   0x6   :  { %129 = vperm.xlu1 %217, %v209_v3   ;;  %68 = vperm.xlu0 %216, %v201_v4  }
   0x7   :  { %9 = vsyncpa [#allocation3], 0  ;;  %v211_v5 = vld [vmem:[%s343_s0 + $0x48] sm:$0xff]  ;;  %v210_v6 = vld [vmem:[%s343_s0 + $0x40] sm:$0xff]  ;;  %s242_s22 = smov 126   ;;  %vm60_vm0 = vcmask 1039360  }
   0x8   :  { %v28_v7 = vld [vmem:[%s343_s0] sm:$0xff]  ;;  %v199_v9 = vld [vmem:[%s343_s0 + $0x8] sm:$0xff]  ;;  %v208_v11 = vld [vmem:[%s343_s0 + $0x30] sm:$0xff]  ;;  %vm97_vm1 = vcmask 1031168  }
   0x9   :  { %v18_v8 = vld [vmem:[%s344_s1] sm:$0xff]  ;;  %v207_v10 = vld [vmem:[%s343_s0 + $0x28] sm:$0xff]  ;;  %s241_s0 = smov 127   ;;  %v203_v27 = vld [vmem:[%s345_s2 + $0x10] sm:$0xff] }
   0xa   :  { %165 = vperm.xlu1 %217, %v211_v5   ;;  %147 = vperm.xlu0 %216, %v210_v6   ;;  %v24_v12 = vld [vmem:[%s345_s2] sm:$0xff]  ;;  %v25_v13 = vld [vmem:[%s345_s2 + $0x8] sm:$0xff]  ;;  %v204_v28 = vld [vmem:[%s345_s2 + $0x18] sm:$0xff]  ;;  %s243_s2 = smov [#allocation2]  }
   0xb   :  { %v26_v18 = vld [vmem:[%s346_s3] sm:$0xff]  ;;  %v27_v19 = vld [vmem:[%s346_s3 + $0x8] sm:$0xff]  ;;  %v205_v34 = vld [vmem:[%s346_s3 + $0x10] sm:$0xff] }
   0xc   :  { %v206_v35 = vld [vmem:[%s346_s3 + $0x18] sm:$0xff]  ;;  %s191_s3 = sshll.u32 %s243_s2, 4  ;;  %s192_s3 = int_to_ptr.vmem [resolvable:$true] %s191_s3 }
   0xd   :  { %s218_s27 = scalar_lea.vmem %s192_s3, 64  ;;  %p223_p1 = scmp.lt.s32.totalorder %s192_s3, %s192_s3 }
   0xe   :  { %31 = vperm.xlu0 %216, %v28_v7   ;;  %21 = vperm.xlu1 %217, %v18_v8   ;;  %p219_p0 = scmp.ne.s32.totalorder %s192_s3, %s218_s27  ;;  %p224_p2 = scmp.lt.s32.totalorder %s218_s27, %s218_s27 }
  0x10   :  { %p225_p3 = por %p224_p2, %p223_p1 }
  0x12   :  { %40 = vperm.xlu0 %216, %v199_v9   ;;  %111 = vperm.xlu1 %217, %v207_v10   ;;  %p226_p4 = pnand %p225_p3, %p219_p0 }
  0x16   :  { %120 = vperm.xlu0 %216, %v208_v11  }
  0x7d   :  { %v87_v14 = vpop.permute.xlu1 %86  ;;  %v50_v15 = vpop.permute.xlu0 %49 }
  0x7e   :  { %v52_v16 = vmul.f32 %v50_v15, %v24_v12  ;;  %v53_v17 = vmul.f32 %v50_v15, %v25_v13  ;;  %v89_v24 = vmul.f32 %v87_v14, %v24_v12  ;;  %v90_v25 = vmul.f32 %v87_v14, %v25_v13 }
  0x80   :  { %58 = vrot.lane.b32.xlu0 %v53_v17, %s241_s0  ;;  %56 = vrot.lane.b32.xlu1 %v52_v16, %s241_s0 }
  0x81   :  { %v130_v20 = vpop.permute.xlu1 %129  ;;  %v69_v21 = vpop.permute.xlu0 %68 }
  0x82   :  { %v71_v22 = vmul.f32 %v69_v21, %v26_v18  ;;  %v72_v23 = vmul.f32 %v69_v21, %v27_v19  ;;  %v132_v31 = vmul.f32 %v203_v27, %v130_v20  ;;  %v133_v32 = vmul.f32 %v204_v28, %v130_v20 }
  0x84   :  { %75 = vrot.lane.b32.xlu0 %v71_v22, %s241_s0  ;;  %77 = vrot.lane.b32.xlu1 %v72_v23, %s241_s0 }
  0x85   :  { %v148_v26 = vpop.permute.xlu0 %147  ;;  %v166_v29 = vpop.permute.xlu1 %165 }
  0x86   :  { %v150_v38 = vmul.f32 %v205_v34, %v148_v26  ;;  %v151_v39 = vmul.f32 %v206_v35, %v148_v26  ;;  %v168_v43 = vmul.f32 %v203_v27, %v166_v29  ;;  %v169_v44 = vmul.f32 %v204_v28, %v166_v29 }
  0x88   :  { %95 = vrot.lane.b32.xlu0 %v90_v25, %s242_s22  ;;  %93 = vrot.lane.b32.xlu1 %v89_v24, %s242_s22 }
  0x89   :  { %v32_v30 = vpop.permute.xlu0 %31  ;;  %v22_v36 = vpop.permute.xlu1 %21 }
  0x8a   :  { %v34_v33 = vmul.f32 %v32_v30, %v24_v12 }
  0x8c   :  { %138 = vrot.lane.b32.xlu0 %v133_v32, %s241_s0  ;;  %136 = vrot.lane.b32.xlu1 %v132_v31, %s241_s0  ;;  %v35_v40 = vadd.f32 %v34_v33, %v22_v36 }
  0x8d   :  { %v41_v37 = vpop.permute.xlu0 %40  ;;  %v112_v45 = vpop.permute.xlu1 %111 }
  0x8e   :  { %v43_v41 = vmul.f32 %v41_v37, %v26_v18  ;;  %v114_v58 = vmul.f32 %v203_v27, %v112_v45 }
  0x90   :  { %v44_v42 = vadd.f32 %v43_v41, %v35_v40  ;;  %156 = vrot.lane.b32.xlu0 %v151_v39, %s241_s0  ;;  %154 = vrot.lane.b32.xlu1 %v150_v38, %s241_s0 }
  0x91   :  { %v121_v46 = vpop.permute.xlu0 %120 }
  0x92   :  { %v123_v60 = vmul.f32 %v205_v34, %v121_v46 }
  0x94   :  { %174 = vrot.lane.b32.xlu0 %v169_v44, %s242_s22  ;;  %172 = vrot.lane.b32.xlu1 %v168_v43, %s242_s22 }
  0xf2   :  { %v59_v47 = vpop.permute.xlu0 %58  ;;  %v57_v48 = vpop.permute.xlu1 %56 }
  0xf3   :  { %v61_v49 = vsel %vm60_vm0, %v57_v48, %v59_v47 }
  0xf4   :  { %v63_v53 = vadd.f32 %v61_v49, %v44_v42 }
  0xf6   :  { %v76_v50 = vpop.permute.xlu0 %75  ;;  %v78_v51 = vpop.permute.xlu1 %77 }
  0xf7   :  { %v79_v52 = vsel %vm60_vm0, %v76_v50, %v78_v51 }
  0xf8   :  { %v81_v54 = vadd.f32 %v79_v52, %v63_v53 }
  0xfa   :  { %v96_v55 = vpop.permute.xlu0 %95  ;;  %v94_v56 = vpop.permute.xlu1 %93 }
  0xfb   :  { %v98_v57 = vsel %vm97_vm1, %v94_v56, %v96_v55 }
  0xfc   :  { %v100_v59 = vadd.f32 %v98_v57, %v81_v54 }
  0xfe   :  { %v115_v61 = vadd.f32 %v114_v58, %v100_v59  ;;  %v139_v62 = vpop.permute.xlu0 %138  ;;  %v137_v63 = vpop.permute.xlu1 %136 }
  0xff   :  { %v140_v1 = vsel %vm60_vm0, %v137_v63, %v139_v62 }
 0x100   :  { %v124_v0 = vadd.f32 %v123_v60, %v115_v61 }
 0x102   :  { %v142_v2 = vadd.f32 %v140_v1, %v124_v0  ;;  %v157_v3 = vpop.permute.xlu0 %156  ;;  %v155_v4 = vpop.permute.xlu1 %154 }
 0x103   :  { %v158_v5 = vsel %vm60_vm0, %v155_v4, %v157_v3 }
 0x104   :  { %v160_v6 = vadd.f32 %v158_v5, %v142_v2 }
 0x106   :  { %v175_v7 = vpop.permute.xlu0 %174  ;;  %v173_v8 = vpop.permute.xlu1 %172 }
 0x107   :  { %v176_v9 = vsel %vm97_vm1, %v173_v8, %v175_v7 }
 0x108   :  { %v178_v10 = vadd.f32 %v176_v9, %v160_v6 }
 0x10a   :  { %v180_v11 = vrot.slane %v178_v10, 4 }
 0x10c   :  { %v182_v12 = vmax.f32 %v178_v10, %v180_v11 }
 0x10e   :  { %v183_v13 = vmax.f32 %v182_v12, 0.0 }
 0x110   :  { %184 = vst [vmem:[#allocation2] sm:$0xf] %v183_v13 }
 0x111   :  { %229 = shalt.err (!%p226_p4)
}
 0x112   :  { %194 = dma.vmem_to_hbm [thread:$0]  %s192_s3, 64, %s347_s4, [#allocation3]  }
 0x113   :  { %238 = dma.done.wait [#allocation3], 64  }
 0x114   :  { %239 = vsyncadd [#allocation3], 4294967232 }
 0x115   :  { %198 = vsyncpa [#allocation3], 1 }

</bundles_post_ra>
